<compile_context>
chip_gen: v7x
topology: tpu7x:2x2x1
jax: 0.10.0
libtpu: 0.0.40
codegen_flags: <defaults>
</compile_context>

<pallas_src>
import jax
import jax.numpy as jnp
from jax import lax
from jax.experimental import pallas as pl
from jax.experimental.pallas import tpu as pltpu


def _round_up(a: int, b: int) -> int:
    return (a + b - 1) // b * b


def _round_down(a: int, b: int) -> int:
    return a // b * b


_SUBLANE = 8
_SMEM_IDS_CAP = 32 * 1024          # max #tokens allowed through scalar prefetch (path B)


def _vmem_capacity_bytes() -> int:
    """Physical VMEM per TensorCore; conservative fallback if the query fails."""
    try:
        info = pltpu.get_tpu_info()
        for attr in ("vmem_capacity_bytes", "vmem_bytes", "vmem_size_bytes"):
            cap = getattr(info, attr, None)
            if cap:
                return int(cap)
    except Exception:
        pass
    return 64 * 1024 * 1024        # v7x floor; safe on v5e/v6e too


# --------------------------------------------------------------------------- #
# Path A: one-hot MXU matmul, vocab tiled on an inner reduction axis.
#   grid = (num_token_blocks [parallel], num_vocab_blocks [arbitrary])
# --------------------------------------------------------------------------- #
def _embed_onehot_kernel(ids_ref, table_ref, out_ref, acc_ref):
    k = pl.program_id(1)
    v_block = table_ref.shape[0]
    t_block = out_ref.shape[0]

    @pl.when(k == 0)
    def _():
        acc_ref[...] = jnp.zeros_like(acc_ref)

    ids = ids_ref[...]                                       # (t_block, 1) int32, pre-clipped
    local = ids - k * v_block                                # id relative to this vocab tile
    cols = lax.broadcasted_iota(jnp.int32, (t_block, v_block), 1)
    one_hot = (local == cols).astype(table_ref.dtype)        # (t_block, v_block)
    acc_ref[...] += jnp.dot(one_hot, table_ref[...],
                            preferred_element_type=jnp.float32)

    @pl.when(k == pl.num_programs(1) - 1)
    def _():
        out_ref[...] = acc_ref[...].astype(out_ref.dtype)    # one dense (t_block, d) store


# --------------------------------------------------------------------------- #
# Path B: table resident in VMEM, row gather unrolled by 8 so every store is a
# dense (8, d_model) tile instead of eight sublane-masked single-row stores.
# --------------------------------------------------------------------------- #
def _embed_gather_kernel(ids_ref, table_ref, out_ref):
    i = pl.program_id(0)
    t_block = out_ref.shape[0]
    base_tok = i * t_block

    @pl.loop(0, t_block // _SUBLANE)
    def _(g):
        rows = []
        for r in range(_SUBLANE):                            # unrolled: 8 dynamic row reads
            idx = ids_ref[base_tok + g * _SUBLANE + r]       # scalar read from SMEM
            rows.append(table_ref[pl.ds(idx, 1), :])
        tile = jnp.concatenate(rows, axis=0)                 # (8, d_model)
        start = pl.multiple_of(g * _SUBLANE, _SUBLANE)
        out_ref[pl.ds(start, _SUBLANE), :] = tile            # single full-tile store


# --------------------------------------------------------------------------- #
# Wrapper
# --------------------------------------------------------------------------- #
def _choose_vocab_block(vocab, d_model, itemsize, t_block, usable):
    """Biggest vocab tile whose (double-buffered) table blocks + one-hot fit VMEM."""
    fixed = 2 * t_block * d_model * itemsize   # double-buffered output blocks
    fixed += t_block * d_model * 4             # f32 accumulator scratch
    fixed += 2 * t_block * 4                   # ids blocks
    if 2 * vocab * d_model * itemsize + t_block * vocab * itemsize + fixed <= usable:
        return vocab                           # whole table resident, DMA'd once
    per_row = 2 * d_model * itemsize + t_block * itemsize
    v = (usable - fixed) // max(per_row, 1)
    v = max(512, _round_down(int(v), 512))
    return int(min(v, _round_up(vocab, 512)))


def token_embedding(x, table, *, block_tokens=256, onehot_vocab_limit=4096,
                    vocab_block=None, force_gather=False, force_onehot=False):
    """Pallas equivalent of nn.Embedding(vocab_size, d_model)(x).

    x:     integer token ids, shape (batch, seq)
    table: embedding weights, shape (vocab_size, d_model)
    returns (batch, seq, d_model) with table's dtype.

    onehot_vocab_limit: above this vocab size the unrolled VMEM gather path is
    preferred (tune lower, ~2K, on v5e whose MXU is only ~197 TF/s).
    """
    batch, seq = x.shape
    vocab_size, d_model = table.shape
    n_tokens = batch * seq
    itemsize = jnp.dtype(table.dtype).itemsize

    # nn.Embedding raises on out-of-range ids; we clamp instead so both paths only
    # ever touch valid rows.  # TODO(synk): no clean in-kernel error-raising path.
    ids = jnp.clip(x.reshape(-1), 0, vocab_size - 1).astype(jnp.int32)

    # Token block: multiple of 8 sublanes, no larger than the padded token count.
    t_block = min(_round_up(int(block_tokens), _SUBLANE), _round_up(n_tokens, _SUBLANE))
    t_block = max(_SUBLANE, t_block)
    n_pad = _round_up(n_tokens, t_block)
    if n_pad != n_tokens:
        ids = jnp.pad(ids, (0, n_pad - n_tokens))   # id 0 is valid; rows sliced off below
    num_t_blocks = n_pad // t_block

    cap = _vmem_capacity_bytes()
    usable = int(cap * 0.75)                        # headroom for compiler scratch
    table_bytes = vocab_size * d_model * itemsize
    out_block_bytes = t_block * d_model * itemsize

    # Gather path only when the (double-buffered) table fits VMEM AND the ids fit the
    # SMEM scalar-prefetch budget; otherwise the streaming one-hot path handles it.
    table_fits_vmem = 2 * table_bytes + 2 * out_block_bytes + (2 << 20) <= usable
    use_gather = force_gather or (
        (not force_onehot)
        and vocab_size > onehot_vocab_limit
        and table_fits_vmem
        and n_pad <= _SMEM_IDS_CAP)

    if use_gather:
        # ------------------------- Path B: unrolled VMEM gather ------------------- #
        vmem_limit = min(cap, max(32 << 20,
                                  2 * table_bytes + 4 * out_block_bytes + (4 << 20)))
        grid_spec = pltpu.PrefetchScalarGridSpec(
            num_scalar_prefetch=1,
            grid=(num_t_blocks,),
            in_specs=[pl.BlockSpec((vocab_size, d_model), lambda i, ids_s: (0, 0))],
            out_specs=pl.BlockSpec((t_block, d_model), lambda i, ids_s: (i, 0)),
        )
        out_flat = pl.pallas_call(
            _embed_gather_kernel,
            out_shape=jax.ShapeDtypeStruct((n_pad, d_model), table.dtype),
            grid_spec=grid_spec,
            compiler_params=pltpu.CompilerParams(
                dimension_semantics=("parallel",),          # v7x: split blocks over 2 TCs
                vmem_limit_bytes=int(vmem_limit)),
        )(ids, table)
    else:
        # ------------------------- Path A: one-hot MXU matmul --------------------- #
        if vocab_block is not None:
            v_block = max(_SUBLANE, _round_up(int(vocab_block), _SUBLANE))
            v_block = min(v_block, _round_up(vocab_size, _SUBLANE))
        else:
            v_block = _choose_vocab_block(vocab_size, d_model, itemsize, t_block, usable)

        vocab_pad = _round_up(vocab_size, v_block)
        tbl = table
        if vocab_pad != vocab_size:
            # Zero-pad (never garbage) so padded vocab rows contribute exactly 0.
            tbl = jnp.pad(table, ((0, vocab_pad - vocab_size), (0, 0)))
        num_v_blocks = vocab_pad // v_block

        ids_col = ids.reshape(n_pad, 1)                      # lives in VMEM, O(1) SMEM
        vmem_limit = min(cap, max(32 << 20,
                                  2 * v_block * d_model * itemsize       # table blocks
                                  + 2 * out_block_bytes                  # output blocks
                                  + t_block * d_model * 4                # f32 accumulator
                                  + t_block * v_block * itemsize         # one-hot value
                                  + (4 << 20)))

        out_flat = pl.pallas_call(
            _embed_onehot_kernel,
            out_shape=jax.ShapeDtypeStruct((n_pad, d_model), table.dtype),
            grid=(num_t_blocks, num_v_blocks),
            in_specs=[
                pl.BlockSpec((t_block, 1), lambda i, k: (i, 0)),
                pl.BlockSpec((v_block, d_model), lambda i, k: (k, 0)),
            ],
            out_specs=pl.BlockSpec((t_block, d_model), lambda i, k: (i, 0)),
            scratch_shapes=[pltpu.VMEM((t_block, d_model), jnp.float32)],
            compiler_params=pltpu.CompilerParams(
                dimension_semantics=("parallel", "arbitrary"),
                vmem_limit_bytes=int(vmem_limit)),
        )(ids_col, tbl)

    if n_pad != n_tokens:
        out_flat = out_flat[:n_tokens]
    return out_flat.reshape(batch, seq, d_model)


if __name__ == "__main__":
    # Small, deterministic setup consistent with the module's forward pass.
    vocab_size, d_model = 64, 32
    batch, seq = 2, 8

    key = jax.random.PRNGKey(0)
    k_table, k_ids = jax.random.split(key)

    # nn.Embedding default init: weights ~ N(0, 1).
    table = jax.random.normal(k_table, (vocab_size, d_model), dtype=jnp.float32)
    x = jax.random.randint(k_ids, (batch, seq), 0, vocab_size, dtype=jnp.int32)

    ref = table[x]   # == torch.nn.Embedding semantics

    # Default path: small vocab -> table resident in VMEM, one-hot MXU matmul.
    out = jax.block_until_ready(token_embedding(x, table))
    assert out.shape == (batch, seq, d_model) and out.dtype == table.dtype
    assert jnp.allclose(out, ref), "one-hot (resident) path mismatch"

    # Vocab-tiled accumulation path (covers tables too large to keep resident).
    out_tiled = jax.block_until_ready(token_embedding(x, table, vocab_block=32))
    assert jnp.allclose(out_tiled, ref), "one-hot (vocab-tiled) path mismatch"

    # Unrolled VMEM row-gather path (auto-selected for large vocabs that fit VMEM).
    out_gather = jax.block_until_ready(token_embedding(x, table, force_gather=True))
    assert jnp.allclose(out_gather, ref), "gather path mismatch"

    print("KERNEL_OK")
</pallas_src>

<mosaic_0001>
module attributes {stable_mosaic.version = 11 : i64} {
  func.func @_embed_onehot_kernel(%arg0: i32, %arg1: i32, %arg2: memref<16x1xi32, #tpu.memory_space<vmem>>, %arg3: memref<64x32xf32, #tpu.memory_space<vmem>>, %arg4: memref<16x32xf32, #tpu.memory_space<vmem>>, %arg5: memref<16x32xf32, #tpu.memory_space<vmem>>) attributes {dimension_semantics = [#tpu.dimension_semantics<parallel>, #tpu.dimension_semantics<arbitrary>], iteration_bounds = array<i64: 1, 1>, scalar_prefetch = 0 : i64, scratch_operands = 1 : i64, tpu.core_type = #tpu.core_type<tc>, window_params = [{transform_indices = @transform_0, window_bounds = array<i64: 16, 1>}, {transform_indices = @transform_1, window_bounds = array<i64: 64, 32>}, {transform_indices = @transform_2, window_bounds = array<i64: 16, 32>}]} {
    %c0_i32 = arith.constant 0 : i32
    %0 = arith.cmpi eq, %arg1, %c0_i32 : i32
    %1 = arith.extui %0 : i1 to i32
    %c0_i32_0 = arith.constant 0 : i32
    %2 = arith.cmpi ne, %1, %c0_i32_0 : i32
    scf.if %2 {
      %cst_10 = arith.constant 0.000000e+00 : f32
      %20 = vector.broadcast %cst_10 : f32 to vector<16x32xf32>
      %c0_11 = arith.constant 0 : index
      %c0_12 = arith.constant 0 : index
      %21 = vector.load %arg5[%c0_11, %c0_12] : memref<16x32xf32, #tpu.memory_space<vmem>>, vector<16x32xf32>
      tpu.vector_store %arg5[%c0_11, %c0_12], %20 {strides = array<i32>} : memref<16x32xf32, #tpu.memory_space<vmem>>, vector<16x32xf32>,
    } else {
    }
    %c0 = arith.constant 0 : index
    %c0_1 = arith.constant 0 : index
    %3 = vector.load %arg2[%c0, %c0_1] : memref<16x1xi32, #tpu.memory_space<vmem>>, vector<16x1xi32>
    %c64_i32 = arith.constant 64 : i32
    %4 = arith.muli %arg1, %c64_i32 : i32
    %5 = vector.broadcast %4 : i32 to vector<16x1xi32>
    %6 = arith.subi %3, %5 : vector<16x1xi32>
    %7 = tpu.iota {dimensions = array<i32: 1>} : vector<16x64xi32>
    %8 = vector.broadcast %6 : vector<16x1xi32> to vector<16x64xi32>
    %9 = arith.cmpi eq, %8, %7 : vector<16x64xi32>
    %10 = arith.extui %9 : vector<16x64xi1> to vector<16x64xi32>
    %11 = arith.sitofp %10 : vector<16x64xi32> to vector<16x64xf32>
    %c0_2 = arith.constant 0 : index
    %c0_3 = arith.constant 0 : index
    %12 = vector.load %arg5[%c0_2, %c0_3] : memref<16x32xf32, #tpu.memory_space<vmem>>, vector<16x32xf32>
    %c0_4 = arith.constant 0 : index
    %c0_5 = arith.constant 0 : index
    %13 = vector.load %arg3[%c0_4, %c0_5] : memref<64x32xf32, #tpu.memory_space<vmem>>, vector<64x32xf32>
    %cst = arith.constant dense<0.000000e+00> : vector<16x32xf32>
    %14 = tpu.matmul %11, %13, %cst {dimension_numbers = #tpu.dot_dimension_numbers<[1], [0], [0], [1], [0, 0, 1, 1], [], []>} : vector<16x64xf32>, vector<64x32xf32>, vector<16x32xf32> -> vector<16x32xf32>
    %15 = arith.addf %12, %14 : vector<16x32xf32>
    %c0_6 = arith.constant 0 : index
    %c0_7 = arith.constant 0 : index
    %16 = vector.load %arg5[%c0_6, %c0_7] : memref<16x32xf32, #tpu.memory_space<vmem>>, vector<16x32xf32>
    tpu.vector_store %arg5[%c0_6, %c0_7], %15 {strides = array<i32>} : memref<16x32xf32, #tpu.memory_space<vmem>>, vector<16x32xf32>,
    %c0_i32_8 = arith.constant 0 : i32
    %17 = arith.cmpi eq, %arg1, %c0_i32_8 : i32
    %18 = arith.extui %17 : i1 to i32
    %c0_i32_9 = arith.constant 0 : i32
    %19 = arith.cmpi ne, %18, %c0_i32_9 : i32
    scf.if %19 {
      %c0_10 = arith.constant 0 : index
      %c0_11 = arith.constant 0 : index
      %20 = vector.load %arg5[%c0_10, %c0_11] : memref<16x32xf32, #tpu.memory_space<vmem>>, vector<16x32xf32>
      %c0_12 = arith.constant 0 : index
      %c0_13 = arith.constant 0 : index
      %21 = vector.load %arg4[%c0_12, %c0_13] : memref<16x32xf32, #tpu.memory_space<vmem>>, vector<16x32xf32>
      tpu.vector_store %arg4[%c0_12, %c0_13], %20 {strides = array<i32>} : memref<16x32xf32, #tpu.memory_space<vmem>>, vector<16x32xf32>,
    } else {
    }
    return
  }
  func.func @transform_0(%arg0: i32, %arg1: i32) -> (i32, i32) {
    %c0_i32 = arith.constant 0 : i32
    %c0_i32_0 = arith.constant 0 : i32
    return %arg0, %c0_i32 : i32, i32
  }
  func.func @transform_1(%arg0: i32, %arg1: i32) -> (i32, i32) {
    %c0_i32 = arith.constant 0 : i32
    %c0_i32_0 = arith.constant 0 : i32
    return %arg1, %c0_i32 : i32, i32
  }
  func.func @transform_2(%arg0: i32, %arg1: i32) -> (i32, i32) {
    %c0_i32 = arith.constant 0 : i32
    %c0_i32_0 = arith.constant 0 : i32
    return %arg0, %c0_i32 : i32, i32
  }
}

</mosaic_0001>

<bundles_post_ra>
// kernel: tpu_custom_call.1
= control target key start
LH: loop header
LB: loop body
LE: loop exit
PB: predicated region body
PF: predicated region fallthrough
CT: control target
= control target key end

     0   :  { %v238_v2 = vmov 0   ;;  %vm16_vm0 = vcmask 261120   ;;  %s306_s0 = inlined_call_operand.vmem [shape: s32[16,1], index: 0, kind: input, shape index: {}]   ;;  %s307_s1 = inlined_call_operand.vmem [shape: f32[64,32], index: 1, kind: input, shape index: {}]   ;;  %s308_s2 = inlined_call_operand.hbm [shape: f32[16,32], index: 2, kind: output, shape index: {}]  }
   0x1   :  { %v19_v0 = vld [vmem:[%s306_s0] sm:$0xff]  ;;  %213 = vset.pattern.permute.xlu0 %v238_v2  ;;  %v42_v3 = vld [vmem:[%s307_s1 + $0x8] sm:$0xff]  ;;  %v43_v4 = vld [vmem:[%s307_s1 + $0x10] sm:$0xff] }
   0x2   :  { %v41_v1 = vld [vmem:[%s307_s1] sm:$0xff]  ;;  %v44_v5 = vld [vmem:[%s307_s1 + $0x18] sm:$0xff]  ;;  %28 = vperm.xlu0 %213, %v19_v0   ;;  %v20_v6 = vld [vmem:[%s306_s0 + $0x8] sm:$0xff] }
   0x3   :  { %v192_v7 = vpack.c.bf16 %v42_v3, %v41_v1  ;;  %v196_v8 = vpack.c.bf16 %v44_v5, %v43_v4  ;;  %v45_v9 = vld [vmem:[%s307_s1 + $0x20] sm:$0xff]  ;;  %v46_v10 = vld [vmem:[%s307_s1 + $0x28] sm:$0xff] }
   0x4   :  { %7 = vsyncpa [#allocation4], 0  ;;  %v239_v11 = vmov 0.0   ;;  %v200_v12 = vpack.c.bf16 %v46_v10, %v45_v9  ;;  %v47_v13 = vld [vmem:[%s307_s1 + $0x30] sm:$0xff]  ;;  %v48_v14 = vld [vmem:[%s307_s1 + $0x38] sm:$0xff]  ;;  %v25_v16 = vlaneseq  ;;  %vm49_vm1 = vcmask 523264  }
   0x5   :  { %193 = vmatprep.subr.bf16.mxu0 %v192_v7  ;;  %17 = vst.msk [vmem:[#allocation2] sm:$0xff] %vm16_vm0, %v239_v11  ;;  %18 = vst.msk [vmem:[#allocation2 + $0x8] sm:$0xff] %vm16_vm0, %v239_v11  ;;  %v204_v15 = vpack.c.bf16 %v48_v14, %v47_v13  ;;  %s240_s1 = smov [#allocation3]  }
   0x6   :  { %195 = vmatpush3.bf16.msra.mxu0 %v192_v7  ;;  %31 = vperm.xlu0 %213, %v20_v6   ;;  %v26_v17 = vand.u32 127, %v25_v16  ;;  %s148_s28 = sshll.u32 %s240_s1, 4  ;;  %s149_s28 = int_to_ptr.vmem [resolvable:$true] %s148_s28 }
   0x7   :  { %197 = vmatprep.subr.bf16.mxu0 %v196_v8  ;;  %s214_s29 = scalar_lea.vmem %s149_s28, 256  ;;  %p219_p1 = scmp.lt.s32.totalorder %s149_s28, %s149_s28 }
   0x8   :  { %p215_p0 = scmp.ne.s32.totalorder %s149_s28, %s214_s29  ;;  %p220_p2 = scmp.lt.s32.totalorder %s214_s29, %s214_s29 }
   0xa   :  { %199 = vmatpush3.bf16.msra.mxu0 %v196_v8  ;;  %p221_p3 = por %p220_p2, %p219_p1 }
   0xb   :  { %201 = vmatprep.subr.bf16.mxu0 %v200_v12 }
   0xc   :  { %v40_v22 = vld [vmem:[#allocation2 + $0x8] sm:$0xff]  ;;  %v39_v23 = vld [vmem:[#allocation2] sm:$0xff]  ;;  %p222_p4 = pnand %p221_p3, %p215_p0 }
   0xe   :  { %203 = vmatpush3.bf16.msra.mxu0 %v200_v12 }
   0xf   :  { %205 = vmatprep.subr.bf16.mxu0 %v204_v15 }
  0x12   :  { %207 = vmatpush3.bf16.msra.mxu0 %v204_v15 }
  0x81   :  { %v29_v18 = vpop.permute.xlu0 %28 }
  0x82   :  { %vm33_vm2 = vcmp.eq.s32.totalorder %v29_v18, %v26_v17 }
  0x83   :  { %v159_v19 = vsel %vm33_vm2, 1.0, %v239_v11 }
  0x84   :  { %189 = vmatprep.mubr.msk.f32.mxu0 %vm49_vm1, %v159_v19 }
  0x85   :  { %v32_v20 = vpop.permute.xlu0 %31 }
  0x86   :  { %vm34_vm3 = vcmp.eq.s32.totalorder %v32_v20, %v26_v17 }
  0x87   :  { %v160_v21 = vsel %vm34_vm3, 1.0, %v239_v11 }
  0x88   :  { %190 = vmatmul.mubr.msk.f32.vlgmr.msra.gmra.mrb[0].mxu0 %vm49_vm1, %v160_v21 }
 0x15b   :  { %v191_v24 = vpop.f32.mrb[0].mxu0 }
 0x15c   :  { %v132_v25 = vadd.f32 %v191_v24, %v40_v22  ;;  %v122_v26 = vpop.f32.mrb[1].mxu0 }
 0x15d   :  { %v131_v27 = vadd.f32 %v122_v26, %v39_v23 }
 0x15e   :  { %135 = vst.msk [vmem:[#allocation2 + $0x8] sm:$0xff] %vm16_vm0, %v132_v25 }
 0x15f   :  { %134 = vst.msk [vmem:[#allocation2] sm:$0xff] %vm16_vm0, %v131_v27 }
 0x165   :  { %v140_v28 = vld [vmem:[#allocation2 + $0x8] sm:$0xff] }
 0x166   :  { %v139_v29 = vld [vmem:[#allocation2] sm:$0xff]  ;;  %142 = vst.msk [vmem:[#allocation3 + $0x8] sm:$0xff] %vm16_vm0, %v140_v28 }
 0x167   :  { %141 = vst.msk [vmem:[#allocation3] sm:$0xff] %vm16_vm0, %v139_v29 }
 0x168   :  { %225 = shalt.err (!%p222_p4)
}
 0x169   :  { %s226_s4 = scalar_lea.hbm %s308_s2, 256 }
 0x16a   :  { %p227_p5 = scmp.ne.s32.totalorder %s308_s2, %s226_s4  ;;  %p230_p6 = scmp.lt.u32.totalorder %s226_s4, %s308_s2 }
 0x16c   :  { %p232_p7 = pnand %p230_p6, %p227_p5 }
 0x16e   :  { %235 = shalt.err (!%p232_p7)
}
 0x16f   :  { %s241_s9 = smov 128   ;;  %s242_s10 = smov 8  }
 0x170   :  { %154 = dma.vmem_to_hbm [thread:$0]  %s149_s28, 256, %s308_s2, [#allocation4], %s241_s9, %s241_s9, %s242_s10  }
 0x171   :  { %236 = dma.done.wait [#allocation4], 256  }
 0x172   :  { %237 = vsyncadd [#allocation4], 4294967040 }
 0x173   :  { %158 = vsyncpa [#allocation4], 1 }

</bundles_post_ra>
